<compile_context>
chip_gen: v7x
topology: tpu7x:2x2x1
jax: 0.10.0
libtpu: 0.0.40
codegen_flags: <defaults>
</compile_context>

<pallas_src>
import functools

import jax
import jax.numpy as jnp
from jax import lax
from jax.experimental import pallas as pl
from jax.experimental.pallas import tpu as pltpu


def _round_up(n, m):
    return ((n + m - 1) // m) * m


def _toy_attn_kernel(x_ref, w_ref, b_ref, o_ref, *, q_tile):
    # x_ref / o_ref: (1, c, S) channel-major block (one batch item).
    # w_ref: (2*cp + cv, c) fused, sublane-padded [Wq ; Wk ; Wv + ones-row].
    # b_ref: (2*cp + cv, 1) matching bias (bk zeroed; ones-row bias = 1).
    c = x_ref.shape[1]
    S = x_ref.shape[2]
    cp = _round_up(c, 8)                 # q / k slab heights (sublane-aligned)
    cv = w_ref.shape[0] - 2 * cp         # v slab height (holds the ones row)

    w = w_ref[...]
    bias = b_ref[...]
    x = x_ref[0]                         # (c, S)

    # K / V projection over the full context, computed once per batch item.
    kv = jnp.dot(w[cp:, :], x, preferred_element_type=jnp.float32) + bias[cp:, :]
    k = kv[0:cp, :]                      # (cp, S), rows c: are zero
    v = kv[cp:cp + cv, :]                # (cv, S): rows 0:c = V, row c = ones

    wq = w[0:cp, :]                      # (cp, c)
    bq = bias[0:cp, :]                   # (cp, 1)

    def body(t, carry):
        qs = pl.multiple_of(t * q_tile, q_tile)
        # Aligned dynamic lane-slice straight off the VMEM ref.
        xq = x_ref[0, :, pl.ds(qs, q_tile)]                          # (c, QT)
        q = jnp.dot(wq, xq, preferred_element_type=jnp.float32) + bq  # (cp, QT)

        # s[i, j] = sum_d q[d, i] * k[d, j]  -> (QT, S); the transpose is
        # folded into the contraction, nothing materialized.
        s = lax.dot_general(q, k, (((0,), (0,)), ((), ())),
                            preferred_element_type=jnp.float32)
        s = s - jnp.max(s, axis=-1, keepdims=True)
        p = jnp.exp(s)                                   # un-normalized probs

        # out[d, i] = sum_j v[d, j] * p[i, j]  -> (cv, QT):
        #   rows 0:c = un-normalized attn @ v ; row c = softmax denominator.
        out = lax.dot_general(v, p, (((1,), (1,)), ((), ())),
                              preferred_element_type=jnp.float32)
        inv_l = pl.reciprocal(out[c:c + 1, :])           # exact; (1, QT), cheap
        o_ref[0, :, pl.ds(qs, q_tile)] = (out[0:c, :] * inv_l).astype(o_ref.dtype)
        return carry

    # Non-unrolled so only one (QT, S) score/prob tile is live at a time.
    lax.fori_loop(0, S // q_tile, body, 0)


def toy_attn_forward(x_nchw, wq, bq, wk, bk, wv, bv):
    """x_nchw: (b, c, h, w). Weights in PyTorch Linear layout: W=(out,in), b=(out,)."""
    b, c, h, w = x_nchw.shape
    S = h * w
    f32 = jnp.float32

    # Channel-major tokens: literally the NCHW buffer reshaped, no transpose.
    x_cs = x_nchw.reshape(b, c, S).astype(f32)

    # Fused, sublane-padded QKV weight / bias.
    cp = _round_up(c, 8)            # q / k slabs
    cv = _round_up(c + 1, 8)        # v slab + ones row (softmax denominator)
    rows = 2 * cp + cv

    wqkv = jnp.zeros((rows, c), f32)
    wqkv = wqkv.at[0:c, :].set(wq.astype(f32))
    wqkv = wqkv.at[cp:cp + c, :].set(wk.astype(f32))
    wqkv = wqkv.at[2 * cp:2 * cp + c, :].set(wv.astype(f32))

    bqkv = jnp.zeros((rows, 1), f32)
    bqkv = bqkv.at[0:c, 0].set(bq.astype(f32))
    # bk intentionally dropped: it adds a per-query constant along the softmax
    # (key) axis, so the softmax output is mathematically unchanged.
    bqkv = bqkv.at[2 * cp:2 * cp + c, 0].set(bv.astype(f32))
    bqkv = bqkv.at[2 * cp + c, 0].set(1.0)   # ones row -> PV matmul emits row sums

    # Query tile: 128 lanes (aligned, unmasked full-lane stores); fall back to
    # the full sequence if S is not a multiple of 128.
    q_tile = 128 if S % 128 == 0 else S

    flops = int(b * (2 * rows * c * S + 2 * cp * S * S + 2 * cv * S * S))
    transcendentals = int(b * S * S)                     # exp in softmax
    bytes_accessed = int(4 * (2 * b * c * S + rows * c + rows))

    kernel = functools.partial(_toy_attn_kernel, q_tile=q_tile)

    out_cs = pl.pallas_call(
        kernel,
        out_shape=jax.ShapeDtypeStruct((b, c, S), f32),
        grid_spec=pltpu.PrefetchScalarGridSpec(
            num_scalar_prefetch=0,
            grid=(b,),
            in_specs=[
                pl.BlockSpec((1, c, S), lambda i: (i, 0, 0)),   # x (channel-major)
                pl.BlockSpec((rows, c), lambda i: (0, 0)),      # fused padded Wqkv
                pl.BlockSpec((rows, 1), lambda i: (0, 0)),      # fused padded bias
            ],
            out_specs=pl.BlockSpec((1, c, S), lambda i: (i, 0, 0)),
        ),
        # "parallel" over batch: megacore shards across both TensorCores on
        # v7x, no-op on single-TC chips (v5e / v6e). No device-kind sniffing.
        compiler_params=pltpu.CompilerParams(
            dimension_semantics=("parallel",)),
        cost_estimate=pl.CostEstimate(
            flops=flops,
            transcendentals=transcendentals,
            bytes_accessed=bytes_accessed),
    )(x_cs, wqkv, bqkv)

    # (b, c, S) -> (b, c, h, w): a plain reshape, no transpose.
    return out_cs.reshape(b, c, h, w)


def _reference(x_nchw, wq, bq, wk, bk, wv, bv):
    b, c, h, w = x_nchw.shape
    x = jnp.transpose(x_nchw.reshape(b, c, h * w), (0, 2, 1))   # (b, S, c)
    q = x @ wq.T + bq
    k = x @ wk.T + bk
    v = x @ wv.T + bv
    attn = jax.nn.softmax(q @ jnp.swapaxes(k, -2, -1), axis=-1)
    out = attn @ v
    return jnp.transpose(out.reshape(b, h, w, c), (0, 3, 1, 2))


if __name__ == "__main__":
    # ToyAttn(in_dim=c, context_dim=c) with context=None (self-attention).
    b, c, h, w = 2, 4, 16, 16

    key = jax.random.PRNGKey(0)
    kx, kwq, kbq, kwk, kbk, kwv, kbv = jax.random.split(key, 7)

    x = jax.random.normal(kx, (b, c, h, w), dtype=jnp.float32)

    # PyTorch Linear layout: W is (out, in), bias is (out,).
    scale = 1.0 / jnp.sqrt(jnp.float32(c))
    wq = jax.random.uniform(kwq, (c, c), jnp.float32, -scale, scale)
    bq = jax.random.uniform(kbq, (c,), jnp.float32, -scale, scale)
    wk = jax.random.uniform(kwk, (c, c), jnp.float32, -scale, scale)
    bk = jax.random.uniform(kbk, (c,), jnp.float32, -scale, scale)
    wv = jax.random.uniform(kwv, (c, c), jnp.float32, -scale, scale)
    bv = jax.random.uniform(kbv, (c,), jnp.float32, -scale, scale)

    out = toy_attn_forward(x, wq, bq, wk, bk, wv, bv)
    out = jax.block_until_ready(out)

    ref = _reference(x, wq, bq, wk, bk, wv, bv)
    assert out.shape == (b, c, h, w)
    # Exact reciprocal in the normalization now; 1e-4 leaves margin for the
    # different (but mathematically equivalent) contraction / reduction order.
    assert jnp.allclose(out, ref, atol=1e-4, rtol=1e-4), "mismatch vs reference"

    print("KERNEL_OK")
</pallas_src>

<mosaic_0001>
module attributes {stable_mosaic.version = 11 : i64} {
  func.func @_toy_attn_kernel(%arg0: i32, %arg1: memref<1x4x256xf32, #tpu.memory_space<vmem>>, %arg2: memref<24x4xf32, #tpu.memory_space<vmem>>, %arg3: memref<24x1xf32, #tpu.memory_space<vmem>>, %arg4: memref<1x4x256xf32, #tpu.memory_space<vmem>>) attributes {dimension_semantics = [#tpu.dimension_semantics<parallel>], iteration_bounds = array<i64: 2>, scalar_prefetch = 0 : i64, scratch_operands = 0 : i64, tpu.core_type = #tpu.core_type<tc>, window_params = [{transform_indices = @transform_0, window_bounds = array<i64: 1, 4, 256>}, {pipeline_mode = #tpu.pipeline_mode<synchronous>, transform_indices = @transform_1, window_bounds = array<i64: 24, 4>}, {pipeline_mode = #tpu.pipeline_mode<synchronous>, transform_indices = @transform_2, window_bounds = array<i64: 24, 1>}, {transform_indices = @transform_3, window_bounds = array<i64: 1, 4, 256>}]} {
    %c0 = arith.constant 0 : index
    %c0_0 = arith.constant 0 : index
    %0 = vector.load %arg2[%c0, %c0_0] : memref<24x4xf32, #tpu.memory_space<vmem>>, vector<24x4xf32>
    %c0_1 = arith.constant 0 : index
    %c0_2 = arith.constant 0 : index
    %1 = vector.load %arg3[%c0_1, %c0_2] : memref<24x1xf32, #tpu.memory_space<vmem>>, vector<24x1xf32>
    %c0_3 = arith.constant 0 : index
    %c0_4 = arith.constant 0 : index
    %c0_5 = arith.constant 0 : index
    %2 = vector.load %arg1[%c0_3, %c0_4, %c0_5] : memref<1x4x256xf32, #tpu.memory_space<vmem>>, vector<1x4x256xf32>
    %3 = vector.shape_cast %2 : vector<1x4x256xf32> to vector<4x256xf32>
    %4 = vector.extract_strided_slice %0 {offsets = [8, 0], sizes = [16, 4], strides = [1, 1]} : vector<24x4xf32> to vector<16x4xf32>
    %cst = arith.constant dense<0.000000e+00> : vector<16x256xf32>
    %5 = tpu.matmul %4, %3, %cst {dimension_numbers = #tpu.dot_dimension_numbers<[1], [0], [0], [1], [0, 0, 1, 1], [], []>} : vector<16x4xf32>, vector<4x256xf32>, vector<16x256xf32> -> vector<16x256xf32>
    %6 = vector.extract_strided_slice %1 {offsets = [8, 0], sizes = [16, 1], strides = [1, 1]} : vector<24x1xf32> to vector<16x1xf32>
    %7 = vector.broadcast %6 : vector<16x1xf32> to vector<16x256xf32>
    %8 = arith.addf %5, %7 : vector<16x256xf32>
    %9 = vector.extract_strided_slice %8 {offsets = [0, 0], sizes = [8, 256], strides = [1, 1]} : vector<16x256xf32> to vector<8x256xf32>
    %10 = vector.extract_strided_slice %8 {offsets = [8, 0], sizes = [8, 256], strides = [1, 1]} : vector<16x256xf32> to vector<8x256xf32>
    %11 = vector.extract_strided_slice %0 {offsets = [0, 0], sizes = [8, 4], strides = [1, 1]} : vector<24x4xf32> to vector<8x4xf32>
    %12 = vector.extract_strided_slice %1 {offsets = [0, 0], sizes = [8, 1], strides = [1, 1]} : vector<24x1xf32> to vector<8x1xf32>
    %c0_i32 = arith.constant 0 : i32
    %c2_i32 = arith.constant 2 : i32
    %13 = arith.addi %c0_i32, %c2_i32 : i32
    %c1_i32 = arith.constant 1 : i32
    scf.for %arg5 = %c0_i32 to %13 step %c1_i32  : i32 {
      %c128_i32 = arith.constant 128 : i32
      %14 = arith.muli %arg5, %c128_i32 : i32
      %15 = tpu.assume_multiple %14, 128 : i32
      %c0_7 = arith.constant 0 : index
      %c0_8 = arith.constant 0 : index
      %16 = arith.index_cast %15 : i32 to index
      %17 = vector.load %arg1[%c0_7, %c0_8, %16] : memref<1x4x256xf32, #tpu.memory_space<vmem>>, vector<1x4x128xf32>
      %18 = vector.shape_cast %17 : vector<1x4x128xf32> to vector<4x128xf32>
      %cst_9 = arith.constant dense<0.000000e+00> : vector<8x128xf32>
      %19 = tpu.matmul %11, %18, %cst_9 {dimension_numbers = #tpu.dot_dimension_numbers<[1], [0], [0], [1], [0, 0, 1, 1], [], []>} : vector<8x4xf32>, vector<4x128xf32>, vector<8x128xf32> -> vector<8x128xf32>
      %20 = vector.broadcast %12 : vector<8x1xf32> to vector<8x128xf32>
      %21 = arith.addf %19, %20 : vector<8x128xf32>
      %cst_10 = arith.constant dense<0.000000e+00> : vector<128x256xf32>
      %22 = tpu.matmul %21, %9, %cst_10 {dimension_numbers = #tpu.dot_dimension_numbers<[0], [0], [1], [1], [0, 1, 1, 1], [], []>} : vector<8x128xf32>, vector<8x256xf32>, vector<128x256xf32> -> vector<128x256xf32>
      %cst_11 = arith.constant dense<0xFF800000> : vector<128xf32>
      %23 = vector.multi_reduction <maximumf>, %22, %cst_11 [1] : vector<128x256xf32> to vector<128xf32>
      %24 = vector.shape_cast %23 : vector<128xf32> to vector<128x1xf32>
      %25 = vector.broadcast %24 : vector<128x1xf32> to vector<128x256xf32>
      %26 = arith.subf %22, %25 : vector<128x256xf32>
      %27 = math.exp %26 : vector<128x256xf32>
      %cst_12 = arith.constant dense<0.000000e+00> : vector<8x128xf32>
      %28 = tpu.matmul %10, %27, %cst_12 {dimension_numbers = #tpu.dot_dimension_numbers<[1], [1], [0], [0], [0, 0, 1, 0], [], []>} : vector<8x256xf32>, vector<128x256xf32>, vector<8x128xf32> -> vector<8x128xf32>
      %29 = vector.extract_strided_slice %28 {offsets = [4, 0], sizes = [1, 128], strides = [1, 1]} : vector<8x128xf32> to vector<1x128xf32>
      %30 = tpu.reciprocal %29 : vector<1x128xf32> -> vector<1x128xf32>
      %31 = vector.extract_strided_slice %28 {offsets = [0, 0], sizes = [4, 128], strides = [1, 1]} : vector<8x128xf32> to vector<4x128xf32>
      %32 = vector.broadcast %30 : vector<1x128xf32> to vector<4x128xf32>
      %33 = arith.mulf %31, %32 : vector<4x128xf32>
      %c0_13 = arith.constant 0 : index
      %c0_14 = arith.constant 0 : index
      %34 = arith.index_cast %15 : i32 to index
      %35 = vector.load %arg4[%c0_13, %c0_14, %34] : memref<1x4x256xf32, #tpu.memory_space<vmem>>, vector<1x4x128xf32>
      %36 = vector.shape_cast %35 : vector<1x4x128xf32> to vector<4x128xf32>
      %37 = vector.shape_cast %33 : vector<4x128xf32> to vector<1x4x128xf32>
      tpu.vector_store %arg4[%c0_13, %c0_14, %34], %37 {strides = array<i32>} : memref<1x4x256xf32, #tpu.memory_space<vmem>>, vector<1x4x128xf32>,
    }
    %c2_i32_6 = arith.constant 2 : i32
    return
  }
  func.func @transform_0(%arg0: i32) -> (i32, i32, i32) {
    %c0_i32 = arith.constant 0 : i32
    %c0_i32_0 = arith.constant 0 : i32
    %c0_i32_1 = arith.constant 0 : i32
    return %arg0, %c0_i32, %c0_i32_0 : i32, i32, i32
  }
  func.func @transform_1(%arg0: i32) -> (i32, i32) {
    %c0_i32 = arith.constant 0 : i32
    %c0_i32_0 = arith.constant 0 : i32
    %c0_i32_1 = arith.constant 0 : i32
    return %c0_i32, %c0_i32_0 : i32, i32
  }
  func.func @transform_2(%arg0: i32) -> (i32, i32) {
    %c0_i32 = arith.constant 0 : i32
    %c0_i32_0 = arith.constant 0 : i32
    %c0_i32_1 = arith.constant 0 : i32
    return %c0_i32, %c0_i32_0 : i32, i32
  }
  func.func @transform_3(%arg0: i32) -> (i32, i32, i32) {
    %c0_i32 = arith.constant 0 : i32
    %c0_i32_0 = arith.constant 0 : i32
    %c0_i32_1 = arith.constant 0 : i32
    return %arg0, %c0_i32, %c0_i32_0 : i32, i32, i32
  }
}

</mosaic_0001>

<bundles_post_ra>
// kernel: tpu_custom_call.1
= control target key start
LH: loop header
LB: loop body
LE: loop exit
PB: predicated region body
PF: predicated region fallthrough
CT: control target
= control target key end

     0   :  { %8 = vsyncpa [#allocation3], 0  ;;  %s1548_s0 = inlined_call_operand.vmem [shape: f32[2,4,256], index: 0, kind: input, shape index: {}]   ;;  %s1549_s1 = inlined_call_operand.vmem [shape: f32[24,4], index: 1, kind: input, shape index: {}]   ;;  %s1550_s2 = inlined_call_operand.vmem [shape: f32[24,1], index: 2, kind: input, shape index: {}]   ;;  %s1551_s3 = inlined_call_operand.hbm [shape: f32[2,4,256], index: 3, kind: output, shape index: {}]  }
   0x1   :  { %10 = vsyncpa [#allocation3 + $0x1], 0  ;;  %s1217_s12 = smov 0   ;;  %s1219_s13 = smov 0  }
   0x2   :  { %s1221_s14 = smov 0   ;;  %s1223_s15 = smov 0  }
   0x3 LB: > { %s1238_s16 = sadd.s32 4294967295, %s1185_s15   ;;  %s918_s17 = sadd.s32 4294967294, %s1185_s15   ;;  %s1185_s15 = sphi %s1223_s15, %s1557_s15   ;;  %s1181_s14 = sphi %s1221_s14, %s1556_s14   ;;  %s1177_s13 = sphi %s1219_s13, %s1555_s13   ;;  %s1173_s12 = sphi %s1217_s12, %s1554_s12  }
   0x4   : > { %s1242_s18 = sadd.s32 1, %s1185_s15   ;;  %s91_s19 = sadd.s32 1, %s1181_s14 }
   0x5   : > { %s88_s20 = ssub.s32 %s1185_s15, %s1242_s18  ;;  %p101_p0 = scmp.ne.s32.totalorder %s1181_s14, %s1177_s13 }
   0x6   : > { %p89_p1 = scmp.eq.s32.totalorder %s88_s20, 0  ;;  %p102_p2 = scmp.eq.s32.totalorder %s1238_s16, 1 }
   0x7   : > { %p107_p3 = scmp.ne.s32.totalorder %s1177_s13, %s1173_s12  ;;  %p108_p4 = scmp.eq.s32.totalorder %s918_s17, 1 }
   0x8   : > { %s1253_s21 = scalar_select %p89_p1, %s1181_s14, %s91_s19  }
   0x9   : > { %p1255_p5 = por %p102_p2, %p101_p0  ;;  %p1259_p6 = por %p108_p4, %p107_p3 }
   0xa   : > { %p921_p7 = scmp.ge.s32.totalorder %s1185_s15, 1  ;;  %p140_p8 = scmp.lt.s32.totalorder %s1185_s15, 3 }
   0xc   : > { %p141_p9 = pnand %p921_p7, %p140_p8 }
   0xd   : > { %s161_s24 = sand.u32 (!%p141_p9), 1, %s1177_s13   ;;  %p164_p10 = scmp.lt.s32.totalorder (!%p141_p9), %s1238_s16, 1  ;;  %v1270_v0 = vld [vmem:[%s1549_s1] sm:$0xff] (!%p141_p9)  ;;  %v1191_v2 = vmov (!%p141_p9), 0.0   ;;  %v173_v3 = vld [vmem:[%s1550_s2 + $0x8] sm:$0xff] (!%p141_p9)  ;;  %v1192_v4 = vmov (!%p141_p9), 0  }
   0xe   : > { %144 = sbr.rel (%p141_p9) target bundleno = 1277 (0x4fd), region = 32  ;;  %v1275_v1 = vld [vmem:[%s1550_s2] sm:$0xff] (!%p141_p9)  ;;  %s1279_s29 = sshll.u32 (!%p141_p9), %s161_s24, 3  ;;  %264 = vmatprep.mubr.f32.mxu0 (!%p141_p9), %v1191_v2  ;;  %270 = vmatprep.mubr.f32.mxu1 (!%p141_p9), %v1191_v2  ;;  %v174_v5 = vld [vmem:[%s1550_s2 + $0x10] sm:$0xff] (!%p141_p9)  ;;  %vm195_vm0 = vcmask (!%p141_p9), 1043456   ;;  %v170_v8 = vld [vmem:[%s1549_s1 + $0x8] sm:$0xff] (!%p141_p9) }
   0xf   : > { %1050 = vset.pattern.permute.xlu0 (!%p141_p9), %v1192_v4  ;;  %vm188_vm1 = vcmask (!%p141_p9), 31744   ;;  %v171_v9 = vld [vmem:[%s1549_s1 + $0x10] sm:$0xff] (!%p141_p9)  ;;  %s163_s26 = scalar_lea.vmem (!%p141_p9), [#allocation2], %s1279_s29  ;;  %s1315_s27 = smov (!%p141_p9), 0  }
  0x10   : > { %178 = vperm.xlu0 (!%p141_p9), %1050, %v173_v3  }
  0x14   : > { %183 = vperm.xlu0 (!%p141_p9), %1050, %v174_v5  }
  0x15   : > { %s165_s5 = scalar_select %p164_p10, %s1238_s16, 1 }
  0x17   : > { %s955_s8 = sshll.u32 %s165_s5, 3 }
  0x18   : > { %s1291_s11 = scalar_lea.vmem %s1548_s0, %s955_s8 }
  0x19   : > { %v175_v6 = vld [vmem:[%s1291_s11] sm:$0xff] }
  0x1a   : > { %v187_v7 = vcombine.high %v175_v6, %v175_v6 }
  0x1c   : > { %925 = vmatprep.subr.msk.mxu0 %vm195_vm0, %v187_v7  ;;  %996 = vmatprep.subr.msk.mxu1 %vm195_vm0, %v187_v7 }
  0x1d   : > { %926 = vmatpush1.msk.msra.mxu0 %vm195_vm0, %v175_v6  ;;  %997 = vmatpush1.msk.msra.mxu1 %vm195_vm0, %v175_v6 }
  0x1e   : > { %927 = vmatmul.mubr.msk.f32.vlgmr.msra.gmra.mrb[0].mxu0 %vm188_vm1, %v170_v8  ;;  %928 = vmatmul.mubr.msk.f32.vlgmr.msra.gmra.mrb[0].mxu1 %vm188_vm1, %v171_v9 }
  0x8f   : > { %v179_v10 = vpop.permute.xlu0 %178 }
  0x93   : > { %v184_v11 = vpop.permute.xlu0 %183 }
  0xf1   : > { %v266_v12 = vpop.f32.mrb[0].mxu0  ;;  %v272_v13 = vpop.f32.mrb[0].mxu1 }
  0xf2   : > { %v1306_v14 = vadd.f32 %v266_v12, %v179_v10  ;;  %v1308_v15 = vadd.f32 %v272_v13, %v184_v11  ;;  %v268_v16 = vpop.f32.mrb[1].mxu0  ;;  %v274_v17 = vpop.f32.mrb[1].mxu1 }
  0xf3   : > { %v1310_v18 = vadd.f32 %v268_v16, %v179_v10  ;;  %v1312_v19 = vadd.f32 %v274_v17, %v184_v11 }
  0xf4 LB: >> { %v1193_v20 = vmov 0.0   ;;  %vm1194_vm2 = vmmov 0   ;;  %s929_s28 = sshll.u32 %s1189_s27, 7  ;;  %v1195_v21 = vmov 0   ;;  %vm402_vm3 = vcmask 64512   ;;  %s282_s27 = sadd.s32 1, %s1189_s27   ;;  %s1189_s27 = sphi %s1315_s27, %s282_s27  }
  0xf5   : >> { %451 = vmatprep.subr.mxu1 %v1310_v18  ;;  %959 = vmatprep.subr.mxu0 %v1193_v20  ;;  %s1325_s30 = sshra.s32 %s929_s28, 7  ;;  %p279_p11 = scmp.ge.s32.totalorder %s282_s27, 2  }
  0xf6   : >> { %961 = vmatprep.mubr.msk.f32.mxu0 %vm1194_vm2, %v1193_v20  ;;  %1052 = vset.pattern.permute.xlu0 %v1195_v21  ;;  %s930_s4 = sshll.u32 %s1325_s30, 2  ;;  %s956_s7 = sshll.u32 (%p279_p11), %s1238_s16, 7 }
  0xf7   : >> { %452 = vmatpush1.msra.mxu1 %v1306_v14  ;;  %291 = vperm.xlu0 %1052, %v1275_v1   ;;  %s287_s5 = scalar_lea.vmem %s1291_s11, %s930_s4  ;;  %s833_s6 = scalar_lea.vmem %s163_s26, %s930_s4 [#allocation2] }
  0xf8   : >> { %515 = vmatprep.mubr.f32.mxu1 %v1193_v20  ;;  %v288_v22 = vld [vmem:[%s287_s5] sm:$0xf]  ;;  %s1508_s10 = scalar_lea.hbm (%p279_p11), %s1551_s3, %s956_s7  ;;  %s850_s17 = sshll.u32 (%p279_p11), %s163_s26, 4  ;;  %s851_s17 = int_to_ptr.vmem [resolvable:$true] %s850_s17 }
  0xf9   : >> { %960 = vmatpush3.msk.msra.mxu0 %vm195_vm0, %v288_v22  ;;  %s836_s19 = scalar_lea.sflag (%p279_p11), [#allocation3], %s161_s24  ;;  %s1119_s20 = scalar_lea.vmem (%p279_p11), %s851_s17, 128 }
  0xfa   : >> { %962 = vmatmul.mubr.msk.f32.vlgmr.msra.gmra.mrb[0].mxu0 %vm188_vm1, %v1270_v0  ;;  %p1120_p12 = scmp.ne.s32.totalorder (%p279_p11), %s851_s17, %s1119_s20  ;;  %s1196_s11 = smov (%p279_p11), [#allocation2]  }
  0xfb   : >> { %820 = vmatprep.mubr.f32.mxu0 %v1312_v19  ;;  %s1123_s25 = sshll.u32 (%p279_p11), %s1196_s11, 4  ;;  %s1124_s25 = int_to_ptr.vmem [resolvable:$false] %s1123_s25 }
  0xfc   : > { %p1121_p13 = pnand (%p279_p11), %p1120_p12, %p1255_p5  ;;  %s1125_s27 = scalar_lea.vmem (%p279_p11), %s1124_s25, 256 }
  0xfd   : > { %p1126_p1 = scmp.lt.s32.totalorder (%p279_p11), %s851_s17, %s1124_s25  ;;  %p1127_p2 = scmp.lt.s32.totalorder (%p279_p11), %s1125_s27, %s1119_s20 }
  0xfe   : > { %p1122_p0 = pneg (%p279_p11), %p1121_p13 }
  0xff   : > { %p1128_p3 = por (%p279_p11), %p1127_p2, %p1126_p1 }
 0x101   : > { %p1129_p4 = pnand (%p279_p11), %p1128_p3, %p1122_p0 }
 0x176   : >> { %v292_v23 = vpop.permute.xlu0 %291 }
 0x1cd   : >> { %v366_v24 = vpop.f32.mrb[0].mxu0 }
 0x1ce   : >> { %v367_v25 = vadd.f32 %v366_v24, %v292_v23  ;;  %v963_v26 = vpop.f32.mrb[1].mxu0 }
 0x1d0   : >> { %370 = vxpose.xlu0.b32.start.end [1/1] (short) %v367_v25, 128 }
 0x250   : >> { %v386_v27 = vpop.trf.xlu0 }
 0x251   : >> { %933 = vmatmul.mubr.msk.f32.vlgmr.msra.gmra.mrb[0].mxu1 %vm402_vm3, %v386_v27 }
 0x252   : >> { %521 = vmatprep.mubr.f32.mxu1 %v1193_v20 }
 0x254   : >> { %v387_v28 = vpop.trf.xlu0 }
 0x255   : >> { %934 = vmatmul.mubr.msk.f32.gmra.mrb[2].mxu1 %vm402_vm3, %v387_v28 }
 0x256   : >> { %527 = vmatprep.mubr.f32.mxu1 %v1193_v20 }
 0x258   : >> { %v388_v29 = vpop.trf.xlu0 }
 0x259   : >> { %935 = vmatmul.mubr.msk.f32.gmra.mrb[4].mxu1 %vm402_vm3, %v388_v29 }
 0x25a   : >> { %533 = vmatprep.mubr.f32.mxu1 %v1193_v20 }
 0x25c   : >> { %v389_v30 = vpop.trf.xlu0 }
 0x25d   : >> { %936 = vmatmul.mubr.msk.f32.gmra.mrb[6].mxu1 %vm402_vm3, %v389_v30 }
 0x25e   : >> { %539 = vmatprep.mubr.f32.mxu1 %v1193_v20 }
 0x260   : >> { %v390_v31 = vpop.trf.xlu0 }
 0x261   : >> { %937 = vmatmul.mubr.msk.f32.gmra.mrb[8].mxu1 %vm402_vm3, %v390_v31 }
 0x262   : >> { %545 = vmatprep.mubr.f32.mxu1 %v1193_v20 }
 0x264   : >> { %v391_v32 = vpop.trf.xlu0 }
 0x265   : >> { %938 = vmatmul.mubr.msk.f32.gmra.mrb[10].mxu1 %vm402_vm3, %v391_v32 }
 0x266   : >> { %551 = vmatprep.mubr.f32.mxu1 %v1193_v20 }
 0x268   : >> { %v392_v33 = vpop.trf.xlu0 }
 0x269   : >> { %939 = vmatmul.mubr.msk.f32.gmra.mrb[12].mxu1 %vm402_vm3, %v392_v33 }
 0x26a   : >> { %557 = vmatprep.mubr.f32.mxu1 %v1193_v20 }
 0x26c   : >> { %v393_v34 = vpop.trf.xlu0 }
 0x26d   : >> { %940 = vmatmul.mubr.msk.f32.gmra.mrb[14].mxu1 %vm402_vm3, %v393_v34 }
 0x26e   : >> { %563 = vmatprep.mubr.f32.mxu1 %v1193_v20 }
 0x270   : >> { %v394_v35 = vpop.trf.xlu0 }
 0x271   : >> { %941 = vmatmul.mubr.msk.f32.gmra.mrb[16].mxu1 %vm402_vm3, %v394_v35 }
 0x272   : >> { %569 = vmatprep.mubr.f32.mxu1 %v1193_v20 }
 0x274   : >> { %v395_v36 = vpop.trf.xlu0 }
 0x275   : >> { %942 = vmatmul.mubr.msk.f32.gmra.mrb[18].mxu1 %vm402_vm3, %v395_v36 }
 0x276   : >> { %575 = vmatprep.mubr.f32.mxu1 %v1193_v20 }
 0x278   : >> { %v396_v37 = vpop.trf.xlu0 }
 0x279   : >> { %943 = vmatmul.mubr.msk.f32.gmra.mrb[20].mxu1 %vm402_vm3, %v396_v37 }
 0x27a   : >> { %581 = vmatprep.mubr.f32.mxu1 %v1193_v20 }
 0x27c   : >> { %v397_v38 = vpop.trf.xlu0 }
 0x27d   : >> { %944 = vmatmul.mubr.msk.f32.gmra.mrb[22].mxu1 %vm402_vm3, %v397_v38 }
 0x27e   : >> { %587 = vmatprep.mubr.f32.mxu1 %v1193_v20 }
 0x280   : >> { %v398_v39 = vpop.trf.xlu0 }
 0x281   : >> { %945 = vmatmul.mubr.msk.f32.gmra.mrb[24].mxu1 %vm402_vm3, %v398_v39 }
 0x282   : >> { %593 = vmatprep.mubr.f32.mxu1 %v1193_v20 }
 0x284   : >> { %v399_v40 = vpop.trf.xlu0 }
 0x285   : >> { %946 = vmatmul.mubr.msk.f32.gmra.mrb[26].mxu1 %vm402_vm3, %v399_v40 }
 0x286   : >> { %599 = vmatprep.mubr.f32.mxu1 %v1193_v20 }
 0x288   : >> { %v400_v41 = vpop.trf.xlu0 }
 0x289   : >> { %947 = vmatmul.mubr.msk.f32.gmra.mrb[28].mxu1 %vm402_vm3, %v400_v41 }
 0x28a   : >> { %605 = vmatprep.mubr.f32.mxu1 %v1193_v20 }
 0x28c   : >> { %v401_v42 = vpop.trf.xlu0 }
 0x28d   : >> { %948 = vmatmul.mubr.msk.f32.gmra.mrb[30].mxu1 %vm402_vm3, %v401_v42 }
 0x324   : >> { %v1368_v43 = vpop.f32.mrb[0].mxu1 }
 0x325   : >> { %v1370_v44 = vpop.f32.mrb[1].mxu1 }
 0x326   : >> { %v612_v45 = vmax.f32 %v1368_v43, %v1370_v44 }
 0x328   : >> { %613 = vmax.xlane.f32.xlu1 %v612_v45  ;;  %v1374_v46 = vpop.f32.mrb[2].mxu1 }
 0x329   : >> { %v1376_v47 = vpop.f32.mrb[3].mxu1 }
 0x32a   : >> { %v615_v48 = vmax.f32 %v1374_v46, %v1376_v47 }
 0x32c   : >> { %616 = vmax.xlane.f32.xlu1 %v615_v48  ;;  %v1380_v49 = vpop.f32.mrb[4].mxu1 }
 0x32d   : >> { %v1382_v50 = vpop.f32.mrb[5].mxu1 }
 0x32e   : >> { %v618_v51 = vmax.f32 %v1380_v49, %v1382_v50 }
 0x330   : >> { %619 = vmax.xlane.f32.xlu1 %v618_v51  ;;  %v1386_v52 = vpop.f32.mrb[6].mxu1 }
 0x331   : >> { %v1388_v53 = vpop.f32.mrb[7].mxu1 }
 0x332   : >> { %v621_v54 = vmax.f32 %v1386_v52, %v1388_v53 }
 0x334   : >> { %622 = vmax.xlane.f32.xlu1 %v621_v54  ;;  %v1392_v55 = vpop.f32.mrb[8].mxu1 }
 0x335   : >> { %v1394_v56 = vpop.f32.mrb[9].mxu1 }
 0x336   : >> { %v624_v57 = vmax.f32 %v1392_v55, %v1394_v56 }
 0x338   : >> { %625 = vmax.xlane.f32.xlu1 %v624_v57  ;;  %v1398_v58 = vpop.f32.mrb[10].mxu1 }
 0x339   : >> { %v1400_v59 = vpop.f32.mrb[11].mxu1 }
 0x33a   : >> { %v627_v60 = vmax.f32 %v1398_v58, %v1400_v59 }
 0x33c   : >> { %628 = vmax.xlane.f32.xlu1 %v627_v60  ;;  %v1404_v61 = vpop.f32.mrb[12].mxu1 }
 0x33d   : >> { %v1406_v62 = vpop.f32.mrb[13].mxu1 }
 0x33e   : >> { %v630_v63 = vmax.f32 %v1404_v61, %v1406_v62 }
 0x340   : >> { %631 = vmax.xlane.f32.xlu1 %v630_v63  ;;  %v1410_v2 = vpop.f32.mrb[14].mxu1 }
 0x341   : >> { %v1412_v3 = vpop.f32.mrb[15].mxu1 }
 0x342   : >> { %v633_v4 = vmax.f32 %v1410_v2, %v1412_v3 }
 0x344   : >> { %634 = vmax.xlane.f32.xlu1 %v633_v4  ;;  %v1416_v5 = vpop.f32.mrb[16].mxu1 }
 0x345   : >> { %v1418_v6 = vpop.f32.mrb[17].mxu1 }
 0x346   : >> { %v636_v7 = vmax.f32 %v1416_v5, %v1418_v6 }
 0x348   : >> { %637 = vmax.xlane.f32.xlu1 %v636_v7  ;;  %v1422_v8 = vpop.f32.mrb[18].mxu1 }
 0x349   : >> { %v1424_v9 = vpop.f32.mrb[19].mxu1 }
 0x34a   : >> { %v639_v10 = vmax.f32 %v1422_v8, %v1424_v9 }
 0x34c   : >> { %640 = vmax.xlane.f32.xlu0 %v639_v10  ;;  %v1428_v11 = vpop.f32.mrb[20].mxu1 }
 0x34d   : >> { %v1430_v12 = vpop.f32.mrb[21].mxu1 }
 0x34e   : >> { %v642_v13 = vmax.f32 %v1428_v11, %v1430_v12 }
 0x350   : >> { %643 = vmax.xlane.f32.xlu1 %v642_v13  ;;  %v1434_v16 = vpop.f32.mrb[22].mxu1 }
 0x351   : >> { %v1436_v17 = vpop.f32.mrb[23].mxu1 }
 0x352   : >> { %v645_v20 = vmax.f32 %v1434_v16, %v1436_v17 }
 0x354   : >> { %646 = vmax.xlane.f32.xlu1 %v645_v20  ;;  %v1440_v21 = vpop.f32.mrb[24].mxu1 }
 0x355   : >> { %v1442_v22 = vpop.f32.mrb[25].mxu1 }
 0x356   : >> { %v648_v23 = vmax.f32 %v1440_v21, %v1442_v22 }
 0x358   : >> { %649 = vmax.xlane.f32.xlu1 %v648_v23  ;;  %v1446_v24 = vpop.f32.mrb[26].mxu1 }
 0x359   : >> { %v1448_v25 = vpop.f32.mrb[27].mxu1 }
 0x35a   : >> { %v651_v26 = vmax.f32 %v1446_v24, %v1448_v25 }
 0x35c   : >> { %652 = vmax.xlane.f32.xlu1 %v651_v26  ;;  %v1452_v27 = vpop.f32.mrb[28].mxu1 }
 0x35d   : >> { %v1454_v28 = vpop.f32.mrb[29].mxu1 }
 0x35e   : >> { %v654_v29 = vmax.f32 %v1452_v27, %v1454_v28 }
 0x360   : >> { %655 = vmax.xlane.f32.xlu1 %v654_v29  ;;  %v1458_v30 = vpop.f32.mrb[30].mxu1 }
 0x361   : >> { %v1460_v31 = vpop.f32.mrb[31].mxu1 }
 0x362   : >> { %v657_v32 = vmax.f32 %v1458_v30, %v1460_v31 }
 0x364   : >> { %658 = vmax.xlane.f32.xlu1 %v657_v32 }
 0x3b5   : >> { %v614_v33 = vpop.xlane.xlu1 %613 }
 0x3b6   : >> { %v660_v34 = vsub.f32 %v1368_v43, %v614_v33  ;;  %v661_v35 = vsub.f32 %v1370_v44, %v614_v33 }
 0x3b8   : >> { %v692_v36 = vmul.f32 1.442695, %v660_v34  ;;  %v694_v37 = vmul.f32 1.442695, %v661_v35 }
 0x3b9   : >> { %v617_v38 = vpop.xlane.xlu1 %616 }
 0x3ba   : >> { %v662_v39 = vsub.f32 %v1374_v46, %v617_v38  ;;  %v663_v40 = vsub.f32 %v1376_v47, %v617_v38  ;;  %1053 = vpow2.f32 %v692_v36 }
 0x3bb   : >> { %1055 = vpow2.f32 %v694_v37 }
 0x3bc   : >> { %v696_v41 = vmul.f32 1.442695, %v662_v39  ;;  %v698_v42 = vmul.f32 1.442695, %v663_v40 }
 0x3bd   : >> { %v620_v45 = vpop.xlane.xlu1 %619 }
 0x3be   : >> { %1057 = vpow2.f32 %v696_v41  ;;  %v664_v48 = vsub.f32 %v1380_v49, %v620_v45  ;;  %v665_v51 = vsub.f32 %v1382_v50, %v620_v45 }
 0x3bf   : >> { %1059 = vpow2.f32 %v698_v42 }
 0x3c0   : >> { %v700_v43 = vmul.f32 1.442695, %v664_v48  ;;  %v702_v44 = vmul.f32 1.442695, %v665_v51 }
 0x3c1   : >> { %v623_v54 = vpop.xlane.xlu1 %622 }
 0x3c2   : >> { %v666_v57 = vsub.f32 %v1386_v52, %v623_v54  ;;  %v667_v46 = vsub.f32 %v1388_v53, %v623_v54  ;;  %1061 = vpow2.f32 %v700_v43 }
 0x3c3   : >> { %1063 = vpow2.f32 %v702_v44 }
 0x3c4   : >> { %v704_v47 = vmul.f32 1.442695, %v666_v57  ;;  %v706_v60 = vmul.f32 1.442695, %v667_v46  ;;  %v1054_v4 = vpop.eup %1053 }
 0x3c5   : >> { %v626_v63 = vpop.xlane.xlu1 %625  ;;  %v1056_v50 = vpop.eup %1055 }
 0x3c6   : >> { %1065 = vpow2.f32 %v704_v47  ;;  %v668_v7 = vsub.f32 %v1392_v55, %v626_v63  ;;  %v669_v49 = vsub.f32 %v1394_v56, %v626_v63 }
 0x3c7   : >> { %1067 = vpow2.f32 %v706_v60 }
 0x3c8   : >> { %v1058_v10 = vpop.eup %1057  ;;  %v708_v13 = vmul.f32 1.442695, %v668_v7  ;;  %v710_v23 = vmul.f32 1.442695, %v669_v49 }
 0x3c9   : >> { %v1060_v20 = vpop.eup %1059  ;;  %v629_v52 = vpop.xlane.xlu1 %628  ;;  %v966_v26 = vpack.c.bf16 %v1058_v10, %v1054_v4 }
 0x3ca   : >> { %v670_v53 = vsub.f32 %v1398_v58, %v629_v52  ;;  %v671_v29 = vsub.f32 %v1400_v59, %v629_v52  ;;  %v964_v32 = vpack.c.bf16 %v1060_v20, %v1056_v50  ;;  %1069 = vpow2.f32 %v708_v13 }
 0x3cb   : >> { %1071 = vpow2.f32 %v710_v23 }
 0x3cc   : >> { %v712_v33 = vmul.f32 1.442695, %v670_v53  ;;  %v714_v34 = vmul.f32 1.442695, %v671_v29  ;;  %965 = vmatprep.subr.bf16.mxu0 %v964_v32  ;;  %v1062_v56 = vpop.eup %1061 }
 0x3cd   : >> { %967 = vmatpush1.bf16.xpose.msra.mxu0 %v966_v26  ;;  %v632_v55 = vpop.xlane.xlu1 %631  ;;  %v1064_v37 = vpop.eup %1063 }
 0x3ce   : >> { %1073 = vpow2.f32 %v712_v33  ;;  %v672_v35 = vsub.f32 %v1404_v61, %v632_v55  ;;  %v673_v36 = vsub.f32 %v1406_v62, %v632_v55 }
 0x3cf   : >> { %1075 = vpow2.f32 %v714_v34 }
 0x3d0   : >> { %v1066_v38 = vpop.eup %1065  ;;  %v716_v58 = vmul.f32 1.442695, %v672_v35  ;;  %v718_v59 = vmul.f32 1.442695, %v673_v36 }
 0x3d1   : >> { %v1068_v39 = vpop.eup %1067  ;;  %v635_v40 = vpop.xlane.xlu1 %634  ;;  %v970_v41 = vpack.c.bf16 %v1066_v38, %v1062_v56 }
 0x3d2   : >> { %v674_v42 = vsub.f32 %v1410_v2, %v635_v40  ;;  %v675_v45 = vsub.f32 %v1412_v3, %v635_v40  ;;  %v968_v48 = vpack.c.bf16 %v1068_v39, %v1064_v37  ;;  %1077 = vpow2.f32 %v716_v58 }
 0x3d3   : >> { %1079 = vpow2.f32 %v718_v59 }
 0x3d4   : >> { %v720_v51 = vmul.f32 1.442695, %v674_v42  ;;  %v722_v43 = vmul.f32 1.442695, %v675_v45  ;;  %969 = vmatprep.subr.bf16.mxu0 %v968_v48  ;;  %v1070_v62 = vpop.eup %1069 }
 0x3d5   : >> { %971 = vmatpush1.bf16.xpose.msra.mxu0 %v970_v41  ;;  %v638_v61 = vpop.xlane.xlu1 %637  ;;  %v1072_v57 = vpop.eup %1071 }
 0x3d6   : >> { %1081 = vpow2.f32 %v720_v51  ;;  %v676_v44 = vsub.f32 %v1416_v5, %v638_v61  ;;  %v677_v54 = vsub.f32 %v1418_v6, %v638_v61 }
 0x3d7   : >> { %1083 = vpow2.f32 %v722_v43 }
 0x3d8   : >> { %v1074_v46 = vpop.eup %1073  ;;  %v724_v2 = vmul.f32 1.442695, %v676_v44  ;;  %v726_v3 = vmul.f32 1.442695, %v677_v54 }
 0x3d9   : >> { %v1076_v47 = vpop.eup %1075  ;;  %v641_v60 = vpop.xlane.xlu0 %640  ;;  %v974_v63 = vpack.c.bf16 %v1074_v46, %v1070_v62 }
 0x3da   : >> { %v678_v4 = vsub.f32 %v1422_v8, %v641_v60  ;;  %v679_v7 = vsub.f32 %v1424_v9, %v641_v60  ;;  %v972_v49 = vpack.c.bf16 %v1076_v47, %v1072_v57  ;;  %1085 = vpow2.f32 %v724_v2 }
 0x3db   : >> { %1087 = vpow2.f32 %v726_v3 }
 0x3dc   : >> { %v728_v50 = vmul.f32 1.442695, %v678_v4  ;;  %v730_v10 = vmul.f32 1.442695, %v679_v7  ;;  %973 = vmatprep.subr.bf16.mxu0 %v972_v49  ;;  %v1078_v6 = vpop.eup %1077 }
 0x3dd   : >> { %975 = vmatpush1.bf16.xpose.msra.mxu0 %v974_v63  ;;  %v644_v5 = vpop.xlane.xlu1 %643  ;;  %v1080_v23 = vpop.eup %1079 }
 0x3de   : >> { %1089 = vpow2.f32 %v728_v50  ;;  %v680_v13 = vsub.f32 %v1428_v11, %v644_v5  ;;  %v681_v20 = vsub.f32 %v1430_v12, %v644_v5 }
 0x3df   : >> { %1091 = vpow2.f32 %v730_v10 }
 0x3e0   : >> { %v1082_v52 = vpop.eup %1081  ;;  %v732_v8 = vmul.f32 1.442695, %v680_v13  ;;  %v734_v9 = vmul.f32 1.442695, %v681_v20  ;;  %v827_v20 = vlaneseq }
 0x3e1   : >> { %v1084_v26 = vpop.eup %1083  ;;  %v647_v53 = vpop.xlane.xlu1 %646  ;;  %v978_v29 = vpack.c.bf16 %v1082_v52, %v1078_v6 }
 0x3e2   : >> { %v682_v32 = vsub.f32 %v1434_v16, %v647_v53  ;;  %v683_v33 = vsub.f32 %v1436_v17, %v647_v53  ;;  %v976_v34 = vpack.c.bf16 %v1084_v26, %v1080_v23  ;;  %1093 = vpow2.f32 %v732_v8 }
 0x3e3   : >> { %1095 = vpow2.f32 %v734_v9  ;;  %v828_v52 = vshrl.u32 %v827_v20, 7 }
 0x3e4   : >> { %v736_v55 = vmul.f32 1.442695, %v682_v32  ;;  %v738_v56 = vmul.f32 1.442695, %v683_v33  ;;  %977 = vmatprep.subr.bf16.mxu0 %v976_v34  ;;  %v1086_v12 = vpop.eup %1085 }
 0x3e5   : >> { %979 = vmatpush1.bf16.xpose.msra.mxu0 %v978_v29  ;;  %v650_v11 = vpop.xlane.xlu1 %649  ;;  %v1088_v37 = vpop.eup %1087  ;;  %v829_v8 = vsub.s32 4, %v828_v52 }
 0x3e6   : >> { %1097 = vpow2.f32 %v736_v55  ;;  %v684_v35 = vsub.f32 %v1440_v21, %v650_v11  ;;  %v685_v36 = vsub.f32 %v1442_v22, %v650_v11 }
 0x3e7   : >> { %1099 = vpow2.f32 %v738_v56 }
 0x3e8   : >> { %v1090_v38 = vpop.eup %1089  ;;  %v740_v16 = vmul.f32 1.442695, %v684_v35  ;;  %v742_v17 = vmul.f32 1.442695, %v685_v36 }
 0x3e9   : >> { %v1092_v58 = vpop.eup %1091  ;;  %v653_v39 = vpop.xlane.xlu1 %652  ;;  %v982_v59 = vpack.c.bf16 %v1090_v38, %v1086_v12 }
 0x3ea   : >> { %v686_v40 = vsub.f32 %v1446_v24, %v653_v39  ;;  %v687_v41 = vsub.f32 %v1448_v25, %v653_v39  ;;  %v980_v42 = vpack.c.bf16 %v1092_v58, %v1088_v37  ;;  %1101 = vpow2.f32 %v740_v16 }
 0x3eb   : >> { %1103 = vpow2.f32 %v742_v17 }
 0x3ec   : >> { %v744_v45 = vmul.f32 1.442695, %v686_v40  ;;  %v746_v48 = vmul.f32 1.442695, %v687_v41  ;;  %981 = vmatprep.subr.bf16.mxu0 %v980_v42  ;;  %v1094_v22 = vpop.eup %1093 }
 0x3ed   : >> { %983 = vmatpush1.bf16.xpose.msra.mxu0 %v982_v59  ;;  %v656_v21 = vpop.xlane.xlu1 %655  ;;  %v1096_v61 = vpop.eup %1095 }
 0x3ee   : >> { %1105 = vpow2.f32 %v744_v45  ;;  %v688_v51 = vsub.f32 %v1452_v27, %v656_v21  ;;  %v689_v43 = vsub.f32 %v1454_v28, %v656_v21 }
 0x3ef   : >> { %1107 = vpow2.f32 %v746_v48 }
 0x3f0   : >> { %v1098_v62 = vpop.eup %1097  ;;  %v748_v24 = vmul.f32 1.442695, %v688_v51  ;;  %v750_v25 = vmul.f32 1.442695, %v689_v43 }
 0x3f1   : >> { %v1100_v44 = vpop.eup %1099  ;;  %v659_v54 = vpop.xlane.xlu1 %658  ;;  %v986_v57 = vpack.c.bf16 %v1098_v62, %v1094_v22 }
 0x3f2   : >> { %v690_v46 = vsub.f32 %v1458_v30, %v659_v54  ;;  %v691_v2 = vsub.f32 %v1460_v31, %v659_v54  ;;  %v984_v47 = vpack.c.bf16 %v1100_v44, %v1096_v61  ;;  %1109 = vpow2.f32 %v748_v24 }
 0x3f3   : >> { %1111 = vpow2.f32 %v750_v25 }
 0x3f4   : >> { %v752_v3 = vmul.f32 1.442695, %v690_v46  ;;  %v754_v60 = vmul.f32 1.442695, %v691_v2  ;;  %985 = vmatprep.subr.bf16.mxu0 %v984_v47  ;;  %v1102_v27 = vpop.eup %1101 }
 0x3f5   : >> { %987 = vmatpush1.bf16.xpose.msra.mxu0 %v986_v57  ;;  %v1104_v28 = vpop.eup %1103 }
 0x3f6   : >> { %1113 = vpow2.f32 %v752_v3 }
 0x3f7   : >> { %1115 = vpow2.f32 %v754_v60 }
 0x3f8   : >> { %v1106_v63 = vpop.eup %1105 }
 0x3f9   : >> { %v1108_v4 = vpop.eup %1107  ;;  %v990_v7 = vpack.c.bf16 %v1106_v63, %v1102_v27 }
 0x3fa   : >> { %v988_v49 = vpack.c.bf16 %v1108_v4, %v1104_v28 }
 0x3fc   : >> { %989 = vmatprep.subr.bf16.mxu0 %v988_v49  ;;  %v1110_v30 = vpop.eup %1109 }
 0x3fd   : >> { %991 = vmatpush1.bf16.xpose.msra.mxu0 %v990_v7  ;;  %v1112_v50 = vpop.eup %1111 }
 0x400   : >> { %v1114_v31 = vpop.eup %1113 }
 0x401   : >> { %v1116_v10 = vpop.eup %1115  ;;  %v994_v5 = vpack.c.bf16 %v1114_v31, %v1110_v30 }
 0x402   : >> { %v992_v6 = vpack.c.bf16 %v1116_v10, %v1112_v50 }
 0x404   : >> { %993 = vmatprep.subr.bf16.mxu0 %v992_v6 }
 0x405   : >> { %995 = vmatpush1.bf16.xpose.msra.mxu0 %v994_v5 }
 0x40c   : >> { %821 = vmatmul.mubr.f32.vlgmr.msra.gmra.mrb[2].mxu0 %v1308_v15 }
 0x4df   : >> { %v822_v13 = vpop.f32.mrb[2].mxu0 }
 0x4e0   : >> { %1117 = vrcp.f32 %v822_v13  ;;  %v824_v23 = vpop.f32.mrb[3].mxu0 }
 0x4e9   : > { %281 = sbr.rel (!%p279_p11) target bundleno = 244 (0xf4), region = 76 }
 0x4ea   : >> { %v1118_v26 = vpop.eup %1117 }
 0x4eb   : >> { %v830_v9 = vrot.slane %v1118_v26, %v829_v8 }
 0x4ed   : >> { %v831_v53 = vmul.f32 %v830_v9, %v822_v13 }
 0x4ef   : >> { %834 = vst [vmem:[%s833_s6] sm:$0xf] %v831_v53 }
 0x4f0   : > { %1132 = shalt.err (!%p1129_p4)
}
 0x4f1   : > { %s1133_s16 = scalar_lea.hbm %s1508_s10, 128  ;;  %s1137_s26 = scalar_lea.hbm %s1551_s3, 256 }
 0x4f2   : > { %p1134_p7 = scmp.ne.s32.totalorder %s1508_s10, %s1133_s16  ;;  %p1138_p10 = scmp.lt.u32.totalorder %s1508_s10, %s1551_s3 }
 0x4f3   : > { %p1139_p11 = scmp.lt.u32.totalorder %s1137_s26, %s1133_s16  ;;  %p1141_p13 = scmp.lt.u32.totalorder %s1133_s16, %s1508_s10 }
 0x4f4   : > { %p1135_p8 = pnand %p1134_p7, %p1255_p5 }
 0x4f5   : > { %p1140_p12 = por %p1139_p11, %p1138_p10 }
 0x4f6   : > { %p1136_p9 = pneg %p1135_p8 }
 0x4f7   : > { %p1142_p0 = por %p1141_p13, %p1140_p12 }
 0x4f9   : > { %p1143_p1 = pnand %p1142_p0, %p1136_p9 }
 0x4fb   : > { %1146 = shalt.err (!%p1143_p1)
}
 0x4fc   : > { %998 = dma.vmem_to_hbm [thread:$0]  (%p1255_p5), %s851_s17, 128, %s1508_s10, %s836_s19  }
 0x4fd PF: > { %p1004_p2 = scmp.ge.s32.totalorder %s1185_s15, 2  ;;  %s862_s4 = sand.u32 1, %s1173_s12  }
 0x4fe   : > { %s863_s5 = scalar_lea.sflag [#allocation3], %s862_s4 }
 0x4ff   : > { %p1001_p3 = pnand %p1004_p2, %p1259_p6 }
 0x501   : > { %1168 = dma.done.wait (!%p1001_p3), %s863_s5, 128  }
 0x502   : > { %1170 = vsyncadd (!%p1001_p3), %s863_s5, 4294967168  ;;  %p13_p4 = scmp.ge.s32.totalorder %s1242_s18, 4   ;;  %s1554_s12 = smov %s1177_s13 }
 0x503   : > { %s1555_s13 = smov %s1181_s14  ;;  %s1556_s14 = smov %s1253_s21 }
 0x504   : > { %s1557_s15 = smov %s1242_s18  ;;  %15 = sbr.rel (!%p13_p4) target bundleno = 3 (0x3), region = 87 }
 0x50b   :  { %868 = vsyncpa [#allocation3], 1 }
 0x50c   :  { %870 = vsyncpa [#allocation3 + $0x1], 1 }

</bundles_post_ra>
